<compile_context>
chip_gen: v7x
topology: tpu7x:2x2x1
jax: 0.10.0
libtpu: 0.0.40
codegen_flags: <defaults>
</compile_context>

<pallas_src>
import jax
import jax.numpy as jnp
from jax.experimental import pallas as pl
from jax.experimental.pallas import tpu as pltpu


def _round_up(x, m):
    return (x + m - 1) // m * m


# ----------------------------------------------------------------------------
# Kernel 1: d = rsqrt(rowsum(A)) with 0-degree rows -> 0   (tiled reduction)
# ----------------------------------------------------------------------------
def _degree_kernel(adj_ref, d_ref, acc_ref):
    k = pl.program_id(1)

    @pl.when(k == 0)
    def _():
        acc_ref[...] = jnp.zeros_like(acc_ref)

    acc_ref[...] += jnp.sum(adj_ref[...].astype(jnp.float32), axis=1,
                            keepdims=True)

    @pl.when(k == pl.num_programs(1) - 1)
    def _():
        rs = acc_ref[...]
        d_ref[...] = jnp.where(rs > 0.0, jax.lax.rsqrt(rs), 0.0)


def compute_deg_inv_sqrt(adj_bf16, tn):
    npad = adj_bf16.shape[0]
    nm = npad // tn
    return pl.pallas_call(
        _degree_kernel,
        out_shape=jax.ShapeDtypeStruct((npad, 1), jnp.float32),
        grid=(nm, nm),
        in_specs=[pl.BlockSpec((tn, tn), lambda i, k: (i, k))],
        out_specs=pl.BlockSpec((tn, 1), lambda i, k: (i, 0)),
        scratch_shapes=[pltpu.VMEM((tn, 1), jnp.float32)],
        compiler_params=pltpu.CompilerParams(
            dimension_semantics=("parallel", "arbitrary"),
            vmem_limit_bytes=48 * 1024 * 1024,
        ),
    )(adj_bf16)


# ----------------------------------------------------------------------------
# Kernel 2: fused  [ FLayers x ( (D A D) @ hide  ->  hide[index] = out ) ]
#                  + a[j]-weighted accumulation of the result
#
# Grid = (layer, M-tile, K-tile); all axes sequential ("arbitrary") because
# the kernel carries VMEM-resident state (hide / out / result) across tiles.
# ----------------------------------------------------------------------------
def _fused_hete_gcn_kernel(inv_ref,                 # scalar-prefetch: [Np] i32
                           a_sm,                    # SMEM [1, FLayers+1] f32
                           feat_ref,                # [TN, Fp] f32 (K-tile of X)
                           adj_ref,                 # [TN, TN] bf16
                           dcol_ref, drow_ref,      # [TN, 1] f32
                           res_ref,                 # out: [Np, Fp] f32 (VMEM-resident)
                           hide_ref, out_ref,       # scratch: [Np, Fp] f32
                           acc_ref):                # scratch: [TN, Fp] f32
    TN = adj_ref.shape[0]
    Np, _Fp = hide_ref.shape
    n_coef = a_sm.shape[1]

    l = pl.program_id(0)
    i = pl.program_id(1)
    k = pl.program_id(2)
    nm = pl.num_programs(1)
    nk = pl.num_programs(2)

    koff = pl.multiple_of(k * TN, TN)
    ioff = pl.multiple_of(i * TN, TN)

    # ---- layer-0 prologue: stream `features` K-tiles into the resident hide
    #      state and initialize result = a[0] * features, tile by tile.
    @pl.when((l == 0) & (i == 0))
    def _():
        f = feat_ref[...]
        hide_ref[pl.ds(koff, TN), :] = f
        res_ref[pl.ds(koff, TN), :] = a_sm[0, 0] * f

    # ---- per-(layer, M-tile) accumulator init.
    @pl.when(k == 0)
    def _():
        acc_ref[...] = jnp.zeros_like(acc_ref)

    # ---- MXU: acc += A[i, k] @ (d[k] * hide[k]).
    # Adjacency is stored / streamed as bf16 (exact for 0/1 entries, halves the
    # dominant HBM traffic); compute is done in f32 to match the reference.
    x = dcol_ref[...] * hide_ref[pl.ds(koff, TN), :]
    adj = adj_ref[...].astype(jnp.float32)
    acc_ref[...] += jnp.dot(adj, x, preferred_element_type=jnp.float32)

    # ---- K-epilogue for this M tile: apply row-side d, stash into `out`.
    @pl.when(k == nk - 1)
    def _():
        out_ref[pl.ds(ioff, TN), :] = drow_ref[...] * acc_ref[...]

    # ---- end of layer: hide <- out[inv]  (== new_features[index] = out),
    #      then result += a[l+1] * hide.
    @pl.when((i == nm - 1) & (k == nk - 1))
    def _():
        # Row permutation done in VMEM (one [1, Fp] copy per row); this is the
        # explicit cost of the reference's HBM scatter, kept on-chip here.
        def gather_row(r, carry):
            s = inv_ref[r]
            hide_ref[pl.ds(r, 1), :] = out_ref[pl.ds(s, 1), :]
            return carry

        jax.lax.fori_loop(0, Np, gather_row, 0)

        coef = a_sm[0, 1]
        for j in range(2, n_coef):                      # static unroll (FLayers small)
            coef = jnp.where(l == j - 1, a_sm[0, j], coef)
        res_ref[...] = res_ref[...] + coef * hide_ref[...]


# ----------------------------------------------------------------------------
# Hete_GCN_layers forward
# ----------------------------------------------------------------------------
def hete_gcn_layers_forward(features, Mat, index, a_in, FLayers=2):
    N, F = features.shape
    num = FLayers + 1

    # Node tile (M and K axes of A), lane/sublane aligned; Fp is lane-dense.
    TN = min(512, _round_up(N, 128))
    Np = _round_up(N, TN)
    Fp = _round_up(F, 128)

    # --- tiny host-side glue: softmax weights, zero padding, inverse perm.
    a = jax.nn.softmax(a_in[:num].astype(jnp.float32), axis=0).reshape(1, num)

    adj = jnp.zeros((Np, Np), jnp.bfloat16).at[:N, :N].set(
        Mat.astype(jnp.bfloat16))
    feat = jnp.zeros((Np, Fp), jnp.float32).at[:N, :F].set(
        features.astype(jnp.float32))

    # new_features[index[i]] = out[i]   <=>   new_features[r] = out[inv[r]]
    # TODO(synk): assumes `index` is a permutation of arange(N) (required for
    # the reference scatter to cover every spmm output row); duplicate indices
    # are order-unspecified in the torch reference as well.
    index = index.astype(jnp.int32)
    inv = jnp.arange(Np, dtype=jnp.int32).at[index].set(
        jnp.arange(N, dtype=jnp.int32))

    # Degree normalization, computed once and shared by all layers.
    d = compute_deg_inv_sqrt(adj, TN)                    # [Np, 1] f32

    nm = Np // TN
    grid = (FLayers, nm, nm)                             # (layer, M, K) — K last

    def feat_map(l, i, k, _s):
        # Features are only consumed during (layer 0, M-tile 0); keep the block
        # index pinned afterwards so they are read from HBM exactly once.
        return (jnp.where((l == 0) & (i == 0), k, 0), 0)

    grid_spec = pltpu.PrefetchScalarGridSpec(
        num_scalar_prefetch=1,                           # inv -> SMEM
        grid=grid,
        in_specs=[
            pl.BlockSpec((1, num), lambda l, i, k, _s: (0, 0),
                         memory_space=pltpu.MemorySpace.SMEM),   # softmax a
            pl.BlockSpec((TN, Fp), feat_map),                    # features
            pl.BlockSpec((TN, TN), lambda l, i, k, _s: (i, k)),  # adjacency (bf16)
            pl.BlockSpec((TN, 1), lambda l, i, k, _s: (k, 0)),   # d (column side)
            pl.BlockSpec((TN, 1), lambda l, i, k, _s: (i, 0)),   # d (row side)
        ],
        # Result is a single VMEM-resident block, written back to HBM once.
        out_specs=pl.BlockSpec((Np, Fp), lambda l, i, k, _s: (0, 0)),
        scratch_shapes=[
            pltpu.VMEM((Np, Fp), jnp.float32),   # hide state (persists across layers)
            pltpu.VMEM((Np, Fp), jnp.float32),   # current layer's spmm output
            pltpu.VMEM((TN, Fp), jnp.float32),   # per-M-tile f32 MXU accumulator
        ],
    )

    result = pl.pallas_call(
        _fused_hete_gcn_kernel,
        out_shape=jax.ShapeDtypeStruct((Np, Fp), jnp.float32),
        grid_spec=grid_spec,
        compiler_params=pltpu.CompilerParams(
            # Sequential grid: the fused kernel carries shared VMEM state
            # (hide/out/result) across M tiles and layers.
            dimension_semantics=("arbitrary", "arbitrary", "arbitrary"),
            vmem_limit_bytes=48 * 1024 * 1024,
        ),
    )(inv, a, feat, adj, d, d)

    return result[:N, :F]


# ----------------------------------------------------------------------------
# Pure-JAX reference (mirrors the torch module) for a correctness check.
# ----------------------------------------------------------------------------
def _reference(features, Mat, index, a_in, FLayers=2):
    a = jax.nn.softmax(a_in[:FLayers + 1].astype(jnp.float32), axis=0)
    rowsum = jnp.sum(Mat, axis=1, keepdims=True)
    d = jnp.where(rowsum > 0.0, rowsum ** -0.5, 0.0)
    hide = features.astype(jnp.float32)
    result = a[0] * hide
    for j in range(FLayers):
        out = d * (Mat.astype(jnp.float32) @ (d * hide))
        hide = hide.at[index].set(out)
        result = result + a[j + 1] * hide
    return result


# ----------------------------------------------------------------------------
# Demo / smoke test
# ----------------------------------------------------------------------------
if __name__ == "__main__":
    key = jax.random.PRNGKey(0)
    k1, k2, k3, k4 = jax.random.split(key, 4)

    N, F = 64, 32          # nodes, feature dim
    FLayers = 2

    # Dense 0/1 adjacency (what the reference normalizes with D^-1/2).
    Mat = (jax.random.uniform(k1, (N, N)) > 0.7).astype(jnp.float32)
    features = jax.random.normal(k2, (N, F), dtype=jnp.float32)
    a_in = jax.random.normal(k3, (5,), dtype=jnp.float32)   # >= FLayers+1 entries
    # index must cover every spmm output row -> permutation of arange(N).
    index = jax.random.permutation(k4, N)

    result = hete_gcn_layers_forward(features, Mat, index, a_in, FLayers=FLayers)
    jax.block_until_ready(result)

    assert result.shape == (N, F) and result.dtype == jnp.float32
    ref = _reference(features, Mat, index, a_in, FLayers=FLayers)
    assert jnp.allclose(result, ref, rtol=1e-3, atol=1e-4), (
        float(jnp.max(jnp.abs(result - ref))))
    print("KERNEL_OK")
</pallas_src>

<mosaic_0001>
module attributes {stable_mosaic.version = 11 : i64} {
  func.func @_degree_kernel(%arg0: i32, %arg1: i32, %arg2: memref<128x128xbf16, #tpu.memory_space<vmem>>, %arg3: memref<128x1xf32, #tpu.memory_space<vmem>>, %arg4: memref<128x1xf32, #tpu.memory_space<vmem>>) attributes {dimension_semantics = [#tpu.dimension_semantics<parallel>, #tpu.dimension_semantics<arbitrary>], iteration_bounds = array<i64: 1, 1>, scalar_prefetch = 0 : i64, scratch_operands = 1 : i64, tpu.core_type = #tpu.core_type<tc>, window_params = [{transform_indices = @transform_0, window_bounds = array<i64: 128, 128>}, {transform_indices = @transform_1, window_bounds = array<i64: 128, 1>}]} {
    %c0_i32 = arith.constant 0 : i32
    %0 = arith.cmpi eq, %arg1, %c0_i32 : i32
    %1 = arith.extui %0 : i1 to i32
    %c0_i32_0 = arith.constant 0 : i32
    %2 = arith.cmpi ne, %1, %c0_i32_0 : i32
    scf.if %2 {
      %cst_8 = arith.constant 0.000000e+00 : f32
      %13 = vector.broadcast %cst_8 : f32 to vector<128x1xf32>
      %c0_9 = arith.constant 0 : index
      %c0_10 = arith.constant 0 : index
      %14 = vector.load %arg4[%c0_9, %c0_10] : memref<128x1xf32, #tpu.memory_space<vmem>>, vector<128x1xf32>
      tpu.vector_store %arg4[%c0_9, %c0_10], %13 {strides = array<i32>} : memref<128x1xf32, #tpu.memory_space<vmem>>, vector<128x1xf32>,
    } else {
    }
    %c0 = arith.constant 0 : index
    %c0_1 = arith.constant 0 : index
    %3 = vector.load %arg4[%c0, %c0_1] : memref<128x1xf32, #tpu.memory_space<vmem>>, vector<128x1xf32>
    %c0_2 = arith.constant 0 : index
    %c0_3 = arith.constant 0 : index
    %4 = vector.load %arg2[%c0_2, %c0_3] : memref<128x128xbf16, #tpu.memory_space<vmem>>, vector<128x128xbf16>
    %5 = arith.extf %4 : vector<128x128xbf16> to vector<128x128xf32>
    %cst = arith.constant dense<0.000000e+00> : vector<128xf32>
    %6 = vector.multi_reduction <add>, %5, %cst [1] : vector<128x128xf32> to vector<128xf32>
    %7 = vector.shape_cast %6 : vector<128xf32> to vector<128x1xf32>
    %8 = arith.addf %3, %7 : vector<128x1xf32>
    %c0_4 = arith.constant 0 : index
    %c0_5 = arith.constant 0 : index
    %9 = vector.load %arg4[%c0_4, %c0_5] : memref<128x1xf32, #tpu.memory_space<vmem>>, vector<128x1xf32>
    tpu.vector_store %arg4[%c0_4, %c0_5], %8 {strides = array<i32>} : memref<128x1xf32, #tpu.memory_space<vmem>>, vector<128x1xf32>,
    %c0_i32_6 = arith.constant 0 : i32
    %10 = arith.cmpi eq, %arg1, %c0_i32_6 : i32
    %11 = arith.extui %10 : i1 to i32
    %c0_i32_7 = arith.constant 0 : i32
    %12 = arith.cmpi ne, %11, %c0_i32_7 : i32
    scf.if %12 {
      %c0_8 = arith.constant 0 : index
      %c0_9 = arith.constant 0 : index
      %13 = vector.load %arg4[%c0_8, %c0_9] : memref<128x1xf32, #tpu.memory_space<vmem>>, vector<128x1xf32>
      %cst_10 = arith.constant 0.000000e+00 : f32
      %14 = vector.broadcast %cst_10 : f32 to vector<128x1xf32>
      %15 = arith.cmpf ogt, %13, %14 : vector<128x1xf32>
      %16 = math.rsqrt %13 : vector<128x1xf32>
      %cst_11 = arith.constant 0.000000e+00 : f32
      %17 = vector.broadcast %cst_11 : f32 to vector<128x1xf32>
      %18 = arith.select %15, %16, %17 : vector<128x1xi1>, vector<128x1xf32>
      %c0_12 = arith.constant 0 : index
      %c0_13 = arith.constant 0 : index
      %19 = vector.load %arg3[%c0_12, %c0_13] : memref<128x1xf32, #tpu.memory_space<vmem>>, vector<128x1xf32>
      tpu.vector_store %arg3[%c0_12, %c0_13], %18 {strides = array<i32>} : memref<128x1xf32, #tpu.memory_space<vmem>>, vector<128x1xf32>,
    } else {
    }
    return
  }
  func.func @transform_0(%arg0: i32, %arg1: i32) -> (i32, i32) {
    %c0_i32 = arith.constant 0 : i32
    return %arg0, %arg1 : i32, i32
  }
  func.func @transform_1(%arg0: i32, %arg1: i32) -> (i32, i32) {
    %c0_i32 = arith.constant 0 : i32
    %c0_i32_0 = arith.constant 0 : i32
    return %arg0, %c0_i32 : i32, i32
  }
}

</mosaic_0001>

<bundles_post_ra>
// kernel: tpu_custom_call.1
= control target key start
LH: loop header
LB: loop body
LE: loop exit
PB: predicated region body
PF: predicated region fallthrough
CT: control target
= control target key end

     0   :  { %6 = vsyncpa [#allocation4], 0  ;;  %s343_s6 = smov [#allocation3]   ;;  %s465_s0 = inlined_call_operand.hbm [shape: bf16[128,128], index: 0, kind: input, shape index: {}]   ;;  %s466_s1 = inlined_call_operand.vmem [shape: f32[128,1], index: 1, kind: output, shape index: {}]  }
   0x1   :  { %s12_s7 = sshll.u32 %s343_s6, 4  ;;  %s319_s10 = scalar_lea.hbm %s465_s0, 1024  ;;  %s13_s7 = int_to_ptr.vmem [resolvable:$true] %s12_s7 }
   0x2   :  { %p320_p0 = scmp.ne.s32.totalorder %s465_s0, %s319_s10  ;;  %p323_p1 = scmp.lt.u32.totalorder %s319_s10, %s465_s0 }
   0x4   :  { %p325_p2 = pnand %p323_p1, %p320_p0 }
   0x6   :  { %328 = shalt.err (!%p325_p2)
}
   0x7   :  { %s329_s15 = scalar_lea.vmem %s13_s7, 1024  ;;  %p334_p4 = scmp.lt.s32.totalorder %s13_s7, %s13_s7 }
   0x8   :  { %p330_p3 = scmp.ne.s32.totalorder %s13_s7, %s329_s15  ;;  %p335_p5 = scmp.lt.s32.totalorder %s329_s15, %s329_s15 }
   0xa   :  { %p336_p6 = por %p335_p5, %p334_p4 }
   0xc   :  { %p337_p7 = pnand %p336_p6, %p330_p3 }
   0xe   :  { %340 = shalt.err (!%p337_p7)
}
   0xf   :  { %s344_s16 = smov 64   ;;  %s345_s17 = smov 4  }
  0x10   :  { %18 = dma.hbm_to_vmem [thread:$0]  %s465_s0, 1024, %s13_s7, [#allocation4], %s344_s16, %s344_s16, %s345_s17  }
  0x11   :  { %341 = dma.done.wait [#allocation4], 1024  }
  0x12   :  { %342 = vsyncadd [#allocation4], 4294966272  ;;  %vm26_vm0 = vcmask 7168   ;;  %v346_v0 = vmov 0.0   ;;  %v276_v1 = vld [vmem:[#allocation3 + $0x8] sm:$0xff]   ;;  %v245_v2 = vld [vmem:[#allocation3] sm:$0xff]  }
  0x13   :  { %29 = vst.msk [vmem:[#allocation2 + $0x10] sm:$0xff] %vm26_vm0, %v346_v0  ;;  %27 = vst.msk [vmem:[#allocation2] sm:$0xff] %vm26_vm0, %v346_v0  ;;  %v250_v3 = vunpack.c.l.bf16 %v276_v1  ;;  %v246_v4 = vunpack.c.l.bf16 %v245_v2  ;;  %v251_v5 = vunpack.c.h.bf16 %v276_v1  ;;  %v247_v6 = vunpack.c.h.bf16 %v245_v2  ;;  %v277_v7 = vld [vmem:[#allocation3 + $0x10] sm:$0xff]   ;;  %v278_v10 = vld [vmem:[#allocation3 + $0x18] sm:$0xff]  }
  0x14   :  { %28 = vst.msk [vmem:[#allocation2 + $0x8] sm:$0xff] %vm26_vm0, %v346_v0  ;;  %30 = vst.msk [vmem:[#allocation2 + $0x18] sm:$0xff] %vm26_vm0, %v346_v0  ;;  %v255_v8 = vunpack.c.h.bf16 %v277_v7  ;;  %v254_v9 = vunpack.c.l.bf16 %v277_v7  ;;  %v259_v11 = vunpack.c.h.bf16 %v278_v10  ;;  %v258_v12 = vunpack.c.l.bf16 %v278_v10  ;;  %v279_v13 = vld [vmem:[#allocation3 + $0x20] sm:$0xff]   ;;  %v280_v16 = vld [vmem:[#allocation3 + $0x28] sm:$0xff]  }
  0x15   :  { %31 = vst.msk [vmem:[#allocation2 + $0x20] sm:$0xff] %vm26_vm0, %v346_v0  ;;  %32 = vst.msk [vmem:[#allocation2 + $0x28] sm:$0xff] %vm26_vm0, %v346_v0  ;;  %95 = vadd.xlane.f32.xlu1 %v250_v3  ;;  %91 = vadd.xlane.f32.xlu0 %v246_v4  ;;  %v263_v14 = vunpack.c.h.bf16 %v279_v13  ;;  %v262_v15 = vunpack.c.l.bf16 %v279_v13  ;;  %v267_v17 = vunpack.c.h.bf16 %v280_v16  ;;  %v266_v18 = vunpack.c.l.bf16 %v280_v16  ;;  %v281_v19 = vld [vmem:[#allocation3 + $0x30] sm:$0xff]   ;;  %v282_v22 = vld [vmem:[#allocation3 + $0x38] sm:$0xff]  }
  0x16   :  { %33 = vst.msk [vmem:[#allocation2 + $0x30] sm:$0xff] %vm26_vm0, %v346_v0  ;;  %34 = vst.msk [vmem:[#allocation2 + $0x38] sm:$0xff] %vm26_vm0, %v346_v0  ;;  %v271_v20 = vunpack.c.h.bf16 %v281_v19  ;;  %v270_v21 = vunpack.c.l.bf16 %v281_v19  ;;  %v275_v23 = vunpack.c.h.bf16 %v282_v22  ;;  %v274_v24 = vunpack.c.l.bf16 %v282_v22 }
  0x17   :  { %35 = vst.msk [vmem:[#allocation2 + $0x40] sm:$0xff] %vm26_vm0, %v346_v0  ;;  %36 = vst.msk [vmem:[#allocation2 + $0x48] sm:$0xff] %vm26_vm0, %v346_v0 }
  0x18   :  { %37 = vst.msk [vmem:[#allocation2 + $0x50] sm:$0xff] %vm26_vm0, %v346_v0  ;;  %38 = vst.msk [vmem:[#allocation2 + $0x58] sm:$0xff] %vm26_vm0, %v346_v0 }
  0x19   :  { %39 = vst.msk [vmem:[#allocation2 + $0x60] sm:$0xff] %vm26_vm0, %v346_v0  ;;  %40 = vst.msk [vmem:[#allocation2 + $0x68] sm:$0xff] %vm26_vm0, %v346_v0  ;;  %97 = vadd.xlane.f32.xlu1 %v251_v5  ;;  %93 = vadd.xlane.f32.xlu0 %v247_v6 }
  0x1a   :  { %41 = vst.msk [vmem:[#allocation2 + $0x70] sm:$0xff] %vm26_vm0, %v346_v0  ;;  %42 = vst.msk [vmem:[#allocation2 + $0x78] sm:$0xff] %vm26_vm0, %v346_v0  ;;  %v45_v25 = vld [vmem:[#allocation2 + $0x10] sm:$0xff]  ;;  %v43_v26 = vld [vmem:[#allocation2] sm:$0xff] }
  0x1b   :  { %v46_v31 = vld [vmem:[#allocation2 + $0x18] sm:$0xff]  ;;  %v44_v32 = vld [vmem:[#allocation2 + $0x8] sm:$0xff] }
  0x1c   :  { %v48_v37 = vld [vmem:[#allocation2 + $0x28] sm:$0xff]  ;;  %v47_v38 = vld [vmem:[#allocation2 + $0x20] sm:$0xff] }
  0x1d   :  { %101 = vadd.xlane.f32.xlu1 %v255_v8  ;;  %99 = vadd.xlane.f32.xlu0 %v254_v9  ;;  %v50_v43 = vld [vmem:[#allocation2 + $0x38] sm:$0xff]  ;;  %v49_v46 = vld [vmem:[#allocation2 + $0x30] sm:$0xff] }
  0x1e   :  { %v52_v51 = vld [vmem:[#allocation2 + $0x48] sm:$0xff]  ;;  %v51_v54 = vld [vmem:[#allocation2 + $0x40] sm:$0xff] }
  0x1f   :  { %v54_v59 = vld [vmem:[#allocation2 + $0x58] sm:$0xff]  ;;  %v53_v62 = vld [vmem:[#allocation2 + $0x50] sm:$0xff] }
  0x20   :  { %v56_v4 = vld [vmem:[#allocation2 + $0x68] sm:$0xff]  ;;  %v55_v9 = vld [vmem:[#allocation2 + $0x60] sm:$0xff] }
  0x21   :  { %105 = vadd.xlane.f32.xlu1 %v259_v11  ;;  %103 = vadd.xlane.f32.xlu0 %v258_v12  ;;  %v58_v16 = vld [vmem:[#allocation2 + $0x78] sm:$0xff] }
  0x25   :  { %109 = vadd.xlane.f32.xlu1 %v263_v14  ;;  %107 = vadd.xlane.f32.xlu0 %v262_v15 }
  0x29   :  { %113 = vadd.xlane.f32.xlu1 %v267_v17  ;;  %111 = vadd.xlane.f32.xlu0 %v266_v18 }
  0x2d   :  { %117 = vadd.xlane.f32.xlu1 %v271_v20  ;;  %115 = vadd.xlane.f32.xlu0 %v270_v21  ;;  %v57_v21 = vld [vmem:[#allocation2 + $0x70] sm:$0xff] }
  0x31   :  { %121 = vadd.xlane.f32.xlu1 %v275_v23  ;;  %119 = vadd.xlane.f32.xlu0 %v274_v24 }
  0xa2   :  { %v96_v27 = vpop.xlane.xlu1 %95  ;;  %v92_v28 = vpop.xlane.xlu0 %91 }
  0xa3   :  { %v125_v29 = vadd.f32 %v96_v27, %v45_v25  ;;  %v123_v30 = vadd.f32 %v92_v28, %v43_v26 }
  0xa5   :  { %142 = vst.msk [vmem:[#allocation2 + $0x10] sm:$0xff] %vm26_vm0, %v125_v29  ;;  %140 = vst.msk [vmem:[#allocation2] sm:$0xff] %vm26_vm0, %v123_v30 }
  0xa6   :  { %v98_v33 = vpop.xlane.xlu1 %97  ;;  %v94_v34 = vpop.xlane.xlu0 %93 }
  0xa7   :  { %v126_v35 = vadd.f32 %v98_v33, %v46_v31  ;;  %v124_v36 = vadd.f32 %v94_v34, %v44_v32 }
  0xa9   :  { %143 = vst.msk [vmem:[#allocation2 + $0x18] sm:$0xff] %vm26_vm0, %v126_v35  ;;  %141 = vst.msk [vmem:[#allocation2 + $0x8] sm:$0xff] %vm26_vm0, %v124_v36 }
  0xaa   :  { %v102_v39 = vpop.xlane.xlu1 %101  ;;  %v100_v40 = vpop.xlane.xlu0 %99 }
  0xab   :  { %v128_v41 = vadd.f32 %v102_v39, %v48_v37  ;;  %v127_v42 = vadd.f32 %v100_v40, %v47_v38 }
  0xac   :  { %v161_v44 = vld [vmem:[#allocation2 + $0x10] sm:$0xff]  ;;  %v159_v45 = vld [vmem:[#allocation2] sm:$0xff] }
  0xad   :  { %287 = vrsqrt.f32 %v161_v44  ;;  %145 = vst.msk [vmem:[#allocation2 + $0x28] sm:$0xff] %vm26_vm0, %v128_v41  ;;  %144 = vst.msk [vmem:[#allocation2 + $0x20] sm:$0xff] %vm26_vm0, %v127_v42  ;;  %vm177_vm1 = vcmp.gt.f32.partialorder %v161_v44, 0.0  ;;  %vm175_vm2 = vcmp.gt.f32.partialorder %v159_v45, 0.0 }
  0xae   :  { %289 = vrsqrt.f32 %v159_v45  ;;  %v106_v47 = vpop.xlane.xlu1 %105  ;;  %v104_v48 = vpop.xlane.xlu0 %103 }
  0xaf   :  { %v130_v49 = vadd.f32 %v106_v47, %v50_v43  ;;  %v129_v50 = vadd.f32 %v104_v48, %v49_v46 }
  0xb0   :  { %v162_v52 = vld [vmem:[#allocation2 + $0x18] sm:$0xff]  ;;  %v160_v53 = vld [vmem:[#allocation2 + $0x8] sm:$0xff] }
  0xb1   :  { %291 = vrsqrt.f32 %v162_v52  ;;  %147 = vst.msk [vmem:[#allocation2 + $0x38] sm:$0xff] %vm26_vm0, %v130_v49  ;;  %146 = vst.msk [vmem:[#allocation2 + $0x30] sm:$0xff] %vm26_vm0, %v129_v50  ;;  %vm178_vm3 = vcmp.gt.f32.partialorder %v162_v52, 0.0  ;;  %vm176_vm4 = vcmp.gt.f32.partialorder %v160_v53, 0.0 }
  0xb2   :  { %293 = vrsqrt.f32 %v160_v53  ;;  %v110_v55 = vpop.xlane.xlu1 %109  ;;  %v108_v56 = vpop.xlane.xlu0 %107 }
  0xb3   :  { %v132_v57 = vadd.f32 %v110_v55, %v52_v51  ;;  %v131_v58 = vadd.f32 %v108_v56, %v51_v54 }
  0xb4   :  { %v164_v60 = vld [vmem:[#allocation2 + $0x28] sm:$0xff]  ;;  %v163_v61 = vld [vmem:[#allocation2 + $0x20] sm:$0xff] }
  0xb5   :  { %295 = vrsqrt.f32 %v164_v60  ;;  %149 = vst.msk [vmem:[#allocation2 + $0x48] sm:$0xff] %vm26_vm0, %v132_v57  ;;  %148 = vst.msk [vmem:[#allocation2 + $0x40] sm:$0xff] %vm26_vm0, %v131_v58  ;;  %vm180_vm5 = vcmp.gt.f32.partialorder %v164_v60, 0.0  ;;  %vm179_vm6 = vcmp.gt.f32.partialorder %v163_v61, 0.0 }
  0xb6   :  { %297 = vrsqrt.f32 %v163_v61  ;;  %v114_v63 = vpop.xlane.xlu1 %113  ;;  %v112_v0 = vpop.xlane.xlu0 %111 }
  0xb7   :  { %v288_v1 = vpop.eup %287  ;;  %v134_v2 = vadd.f32 %v114_v63, %v54_v59  ;;  %v133_v3 = vadd.f32 %v112_v0, %v53_v62 }
  0xb8   :  { %v290_v5 = vpop.eup %289  ;;  %v209_v6 = vsel %vm177_vm1, %v288_v1, 0.0  ;;  %v166_v7 = vld [vmem:[#allocation2 + $0x38] sm:$0xff]  ;;  %v165_v8 = vld [vmem:[#allocation2 + $0x30] sm:$0xff] }
  0xb9   :  { %225 = vst.msk [vmem:[%s466_s1 + $0x10] sm:$0xff] %vm26_vm0, %v209_v6  ;;  %v207_v10 = vsel %vm175_vm2, %v290_v5, 0.0  ;;  %299 = vrsqrt.f32 %v166_v7  ;;  %151 = vst.msk [vmem:[#allocation2 + $0x58] sm:$0xff] %vm26_vm0, %v134_v2  ;;  %vm182_vm7 = vcmp.gt.f32.partialorder %v166_v7, 0.0  ;;  %vm181_vm8 = vcmp.gt.f32.partialorder %v165_v8, 0.0 }
  0xba   :  { %150 = vst.msk [vmem:[#allocation2 + $0x50] sm:$0xff] %vm26_vm0, %v133_v3  ;;  %223 = vst.msk [vmem:[%s466_s1] sm:$0xff] %vm26_vm0, %v207_v10  ;;  %301 = vrsqrt.f32 %v165_v8  ;;  %v118_v11 = vpop.xlane.xlu1 %117  ;;  %v116_v12 = vpop.xlane.xlu0 %115 }
  0xbb   :  { %v292_v13 = vpop.eup %291  ;;  %v136_v14 = vadd.f32 %v118_v11, %v56_v4  ;;  %v135_v15 = vadd.f32 %v116_v12, %v55_v9 }
  0xbc   :  { %v294_v17 = vpop.eup %293  ;;  %v210_v18 = vsel %vm178_vm3, %v292_v13, 0.0  ;;  %v168_v19 = vld [vmem:[#allocation2 + $0x48] sm:$0xff]  ;;  %v167_v20 = vld [vmem:[#allocation2 + $0x40] sm:$0xff] }
  0xbd   :  { %226 = vst.msk [vmem:[%s466_s1 + $0x18] sm:$0xff] %vm26_vm0, %v210_v18  ;;  %v208_v22 = vsel %vm176_vm4, %v294_v17, 0.0  ;;  %303 = vrsqrt.f32 %v168_v19  ;;  %153 = vst.msk [vmem:[#allocation2 + $0x68] sm:$0xff] %vm26_vm0, %v136_v14  ;;  %vm184_vm9 = vcmp.gt.f32.partialorder %v168_v19, 0.0  ;;  %vm183_vm10 = vcmp.gt.f32.partialorder %v167_v20, 0.0 }
  0xbe   :  { %152 = vst.msk [vmem:[#allocation2 + $0x60] sm:$0xff] %vm26_vm0, %v135_v15  ;;  %224 = vst.msk [vmem:[%s466_s1 + $0x8] sm:$0xff] %vm26_vm0, %v208_v22  ;;  %305 = vrsqrt.f32 %v167_v20  ;;  %v122_v23 = vpop.xlane.xlu1 %121  ;;  %v120_v24 = vpop.xlane.xlu0 %119 }
  0xbf   :  { %v296_v25 = vpop.eup %295  ;;  %v138_v26 = vadd.f32 %v122_v23, %v58_v16  ;;  %v137_v27 = vadd.f32 %v120_v24, %v57_v21 }
  0xc0   :  { %v298_v28 = vpop.eup %297  ;;  %v212_v29 = vsel %vm180_vm5, %v296_v25, 0.0  ;;  %v170_v30 = vld [vmem:[#allocation2 + $0x58] sm:$0xff] }
  0xc1   :  { %v169_v31 = vld [vmem:[#allocation2 + $0x50] sm:$0xff]  ;;  %228 = vst.msk [vmem:[%s466_s1 + $0x28] sm:$0xff] %vm26_vm0, %v212_v29  ;;  %v211_v32 = vsel %vm179_vm6, %v298_v28, 0.0  ;;  %307 = vrsqrt.f32 %v170_v30  ;;  %155 = vst.msk [vmem:[#allocation2 + $0x78] sm:$0xff] %vm26_vm0, %v138_v26  ;;  %vm186_vm11 = vcmp.gt.f32.partialorder %v170_v30, 0.0 }
  0xc2   :  { %154 = vst.msk [vmem:[#allocation2 + $0x70] sm:$0xff] %vm26_vm0, %v137_v27  ;;  %227 = vst.msk [vmem:[%s466_s1 + $0x20] sm:$0xff] %vm26_vm0, %v211_v32  ;;  %309 = vrsqrt.f32 %v169_v31  ;;  %vm185_vm12 = vcmp.gt.f32.partialorder %v169_v31, 0.0 }
  0xc3   :  { %v300_v33 = vpop.eup %299 }
  0xc4   :  { %v302_v34 = vpop.eup %301  ;;  %v214_v35 = vsel %vm182_vm7, %v300_v33, 0.0  ;;  %v172_v36 = vld [vmem:[#allocation2 + $0x68] sm:$0xff] }
  0xc5   :  { %v171_v37 = vld [vmem:[#allocation2 + $0x60] sm:$0xff]  ;;  %230 = vst.msk [vmem:[%s466_s1 + $0x38] sm:$0xff] %vm26_vm0, %v214_v35  ;;  %v213_v38 = vsel %vm181_vm8, %v302_v34, 0.0  ;;  %311 = vrsqrt.f32 %v172_v36  ;;  %vm188_vm13 = vcmp.gt.f32.partialorder %v172_v36, 0.0 }
  0xc6   :  { %229 = vst.msk [vmem:[%s466_s1 + $0x30] sm:$0xff] %vm26_vm0, %v213_v38  ;;  %313 = vrsqrt.f32 %v171_v37  ;;  %vm187_vm14 = vcmp.gt.f32.partialorder %v171_v37, 0.0 }
  0xc7   :  { %v304_v39 = vpop.eup %303 }
  0xc8   :  { %v306_v40 = vpop.eup %305  ;;  %v216_v41 = vsel %vm184_vm9, %v304_v39, 0.0  ;;  %v174_v42 = vld [vmem:[#allocation2 + $0x78] sm:$0xff] }
  0xc9   :  { %v173_v43 = vld [vmem:[#allocation2 + $0x70] sm:$0xff]  ;;  %232 = vst.msk [vmem:[%s466_s1 + $0x48] sm:$0xff] %vm26_vm0, %v216_v41  ;;  %v215_v44 = vsel %vm183_vm10, %v306_v40, 0.0  ;;  %315 = vrsqrt.f32 %v174_v42  ;;  %vm190_vm15 = vcmp.gt.f32.partialorder %v174_v42, 0.0 }
  0xca   :  { %231 = vst.msk [vmem:[%s466_s1 + $0x40] sm:$0xff] %vm26_vm0, %v215_v44  ;;  %317 = vrsqrt.f32 %v173_v43  ;;  %vm189_vm1 = vcmp.gt.f32.partialorder %v173_v43, 0.0 }
  0xcb   :  { %v308_v45 = vpop.eup %307 }
  0xcc   :  { %v310_v46 = vpop.eup %309  ;;  %v218_v47 = vsel %vm186_vm11, %v308_v45, 0.0 }
  0xcd   :  { %234 = vst.msk [vmem:[%s466_s1 + $0x58] sm:$0xff] %vm26_vm0, %v218_v47  ;;  %v217_v48 = vsel %vm185_vm12, %v310_v46, 0.0 }
  0xce   :  { %233 = vst.msk [vmem:[%s466_s1 + $0x50] sm:$0xff] %vm26_vm0, %v217_v48 }
  0xcf   :  { %v312_v49 = vpop.eup %311 }
  0xd0   :  { %v314_v50 = vpop.eup %313  ;;  %v220_v51 = vsel %vm188_vm13, %v312_v49, 0.0 }
  0xd1   :  { %236 = vst.msk [vmem:[%s466_s1 + $0x68] sm:$0xff] %vm26_vm0, %v220_v51  ;;  %v219_v52 = vsel %vm187_vm14, %v314_v50, 0.0 }
  0xd2   :  { %235 = vst.msk [vmem:[%s466_s1 + $0x60] sm:$0xff] %vm26_vm0, %v219_v52 }
  0xd3   :  { %v316_v53 = vpop.eup %315 }
  0xd4   :  { %v318_v54 = vpop.eup %317  ;;  %v222_v55 = vsel %vm190_vm15, %v316_v53, 0.0 }
  0xd5   :  { %238 = vst.msk [vmem:[%s466_s1 + $0x78] sm:$0xff] %vm26_vm0, %v222_v55  ;;  %v221_v56 = vsel %vm189_vm1, %v318_v54, 0.0 }
  0xd6   :  { %237 = vst.msk [vmem:[%s466_s1 + $0x70] sm:$0xff] %vm26_vm0, %v221_v56 }
  0xd7   :  { %243 = vsyncpa [#allocation4], 1 }

</bundles_post_ra>
